<compile_context>
chip_gen: v5e
topology: v5e:2x2
jax: 0.10.0
libtpu: 0.0.40
codegen_flags: <defaults>
</compile_context>

<pallas_src>
import math

import jax
import jax.numpy as jnp
from jax.experimental import pallas as pl
from jax.experimental.pallas import tpu as pltpu

HIDDEN_DIM = 256   # fixed in the PyTorch module
LANE = 128


def _cdiv(a, b):
    return -(-a // b)


def _round_up(n, m):
    return ((n + m - 1) // m) * m


def _softplus_f32(z):
    # Numerically stable softplus: max(z, 0) + log1p(exp(-|z|)), in f32.
    return jnp.maximum(z, 0.0) + jnp.log1p(jnp.exp(-jnp.abs(z)))


def beta_policy_kernel(x_ref, w1_ref, b1_ref, w2_ref, b2_ref, wab_ref, bab_ref,
                       out_ref):
    # x tile: (TB, obs_pad) bf16 (cast once in the wrapper). Weights are bf16;
    # all matmuls accumulate in f32 on the MXU, elementwise math stays f32.
    h1 = jnp.dot(x_ref[...], w1_ref[...],
                 preferred_element_type=jnp.float32) + b1_ref[...]
    h1 = jnp.maximum(h1, 0.0)

    h2 = jnp.dot(h1.astype(jnp.bfloat16), w2_ref[...],
                 preferred_element_type=jnp.float32) + b2_ref[...]
    h2 = jnp.maximum(h2, 0.0)

    # Fused alpha|beta head, lane-padded to 128 columns -> one unmasked store.
    z = jnp.dot(h2.astype(jnp.bfloat16), wab_ref[...],
                preferred_element_type=jnp.float32) + bab_ref[...]
    out_ref[...] = _softplus_f32(z) + 1.0


def pack_params(w1, b1, w2, b2, wa, ba, wb, bb):
    """Fuse + pad + cast the per-layer params once, outside the hot path."""
    obs_dim = w1.shape[0]
    action_dim = wa.shape[1]
    obs_pad = _round_up(obs_dim, LANE)
    head_pad = _round_up(2 * action_dim, LANE)

    w1p = jnp.zeros((obs_pad, HIDDEN_DIM), jnp.float32).at[:obs_dim, :].set(w1)
    wab = jnp.concatenate([wa, wb], axis=1)
    wabp = jnp.zeros((HIDDEN_DIM, head_pad), jnp.float32).at[:, :2 * action_dim].set(wab)
    bab = jnp.concatenate([ba, bb], axis=1)
    babp = jnp.zeros((1, head_pad), jnp.float32).at[:, :2 * action_dim].set(bab)

    # NOTE: biases stay as 2-D (1, N) arrays; their BlockSpecs equal the full
    # array dims, which is what makes the (8,128) rule accept them.
    return dict(
        w1=w1p.astype(jnp.bfloat16), b1=b1.astype(jnp.float32),
        w2=w2.astype(jnp.bfloat16),  b2=b2.astype(jnp.float32),
        wab=wabp.astype(jnp.bfloat16), bab=babp.astype(jnp.float32),
        obs_dim=obs_dim, action_dim=action_dim,
    )


def _choose_batch_tile(B, block_b):
    """Pick (tb, b_pad, n_steps) bounding last-tile padding waste and
    guaranteeing >= 2 grid steps for mid/large batches (v7x megacore)."""
    n_steps = _cdiv(B, block_b)
    if n_steps == 1 and B > 512:
        n_steps = 2
    tb = _round_up(_cdiv(B, n_steps), 8)
    b_pad = tb * n_steps
    return tb, b_pad, n_steps


def beta_policy_forward(x, packed, *, block_b=1024):
    """x: (B, obs_dim) f32 -> (alpha, beta), each (B, action_dim) f32."""
    B, obs_dim = x.shape
    A = packed["action_dim"]
    obs_pad = packed["w1"].shape[0]
    head_pad = packed["wab"].shape[1]

    tb, b_pad, n_steps = _choose_batch_tile(B, block_b)

    # Cast once to bf16 (halves streaming DMA); pad only if actually needed.
    xp = x.astype(jnp.bfloat16)
    if b_pad != B or obs_pad != obs_dim:
        xp = jnp.pad(xp, ((0, b_pad - B), (0, obs_pad - obs_dim)))

    grid = (n_steps,)

    flops = 2 * b_pad * (obs_pad * HIDDEN_DIM
                         + HIDDEN_DIM * HIDDEN_DIM
                         + HIDDEN_DIM * head_pad)
    bytes_accessed = (xp.size * 2
                      + (packed["w1"].size + packed["w2"].size + packed["wab"].size) * 2
                      + (2 * HIDDEN_DIM + head_pad) * 4
                      + b_pad * head_pad * 4)
    transcendentals = 2 * b_pad * head_pad  # exp + log1p per output element

    # VMEM footprint: double-buffered x/out tiles + resident weights/biases
    # + f32 intermediates (h1, h2, z). Request 2x that (headroom for compiler
    # scratch), never the whole 64 MiB v7x VMEM.
    vmem_est = (2 * tb * obs_pad * 2                       # x tiles, bf16
                + 2 * tb * head_pad * 4                    # out tiles, f32
                + (packed["w1"].size + packed["w2"].size + packed["wab"].size) * 2
                + (2 * HIDDEN_DIM + head_pad) * 4          # biases
                + tb * (2 * HIDDEN_DIM + head_pad) * 4)    # h1, h2, z
    vmem_limit = min(_round_up(2 * vmem_est + (2 << 20), 1 << 20),
                     32 * 1024 * 1024)

    out = pl.pallas_call(
        beta_policy_kernel,
        out_shape=jax.ShapeDtypeStruct((b_pad, head_pad), jnp.float32),
        grid_spec=pltpu.PrefetchScalarGridSpec(
            num_scalar_prefetch=0,
            grid=grid,
            in_specs=[
                # batch-tiled activation (the only per-step streaming input)
                pl.BlockSpec((tb, obs_pad), lambda i: (i, 0)),
                # resident weights / biases (constant block index -> no re-DMA)
                pl.BlockSpec((obs_pad, HIDDEN_DIM), lambda i: (0, 0)),
                pl.BlockSpec((1, HIDDEN_DIM), lambda i: (0, 0)),
                pl.BlockSpec((HIDDEN_DIM, HIDDEN_DIM), lambda i: (0, 0)),
                pl.BlockSpec((1, HIDDEN_DIM), lambda i: (0, 0)),
                pl.BlockSpec((HIDDEN_DIM, head_pad), lambda i: (0, 0)),
                pl.BlockSpec((1, head_pad), lambda i: (0, 0)),
            ],
            out_specs=pl.BlockSpec((tb, head_pad), lambda i: (i, 0)),
        ),
        compiler_params=pltpu.CompilerParams(
            dimension_semantics=("parallel",),      # shards batch across TCs on v7x
            vmem_limit_bytes=int(vmem_limit),
        ),
        cost_estimate=pl.CostEstimate(
            flops=int(flops),
            transcendentals=int(transcendentals),
            bytes_accessed=int(bytes_accessed),
        ),
    )(xp, packed["w1"], packed["b1"], packed["w2"], packed["b2"],
      packed["wab"], packed["bab"])

    alpha = out[:B, :A]
    beta = out[:B, A:2 * A]
    return alpha, beta


# ---------------------------------------------------------------------------
# init + pure-JAX reference (f32, unfused) for correctness checking
# ---------------------------------------------------------------------------

def xavier_uniform(key, fan_in, fan_out, gain=1.0):
    # Matches torch.nn.init.xavier_uniform_ on a (out, in) Linear weight; we
    # directly materialize the transposed (in, out) layout.
    bound = gain * math.sqrt(6.0 / (fan_in + fan_out))
    return jax.random.uniform(key, (fan_in, fan_out), jnp.float32, -bound, bound)


def init_params(key, obs_dim, action_dim, hidden_dim=HIDDEN_DIM):
    k1, k2, k3, k4 = jax.random.split(key, 4)
    w1 = xavier_uniform(k1, obs_dim, hidden_dim)
    b1 = jnp.zeros((1, hidden_dim), jnp.float32)      # constant_(bias, 0)
    w2 = xavier_uniform(k2, hidden_dim, hidden_dim)
    b2 = jnp.zeros((1, hidden_dim), jnp.float32)
    wa = xavier_uniform(k3, hidden_dim, action_dim)
    ba = jnp.zeros((1, action_dim), jnp.float32)
    wb = xavier_uniform(k4, hidden_dim, action_dim)
    bb = jnp.zeros((1, action_dim), jnp.float32)
    return (w1, b1, w2, b2, wa, ba, wb, bb)


def beta_policy_forward_ref(x, params):
    w1, b1, w2, b2, wa, ba, wb, bb = params
    h1 = jax.nn.relu(x @ w1 + b1)
    h2 = jax.nn.relu(h1 @ w2 + b2)
    alpha = jax.nn.softplus(h2 @ wa + ba) + 1.0
    beta = jax.nn.softplus(h2 @ wb + bb) + 1.0
    return alpha, beta


def _check(x, packed, params, **kw):
    alpha, beta = beta_policy_forward(x, packed, **kw)
    jax.block_until_ready((alpha, beta))
    alpha_ref, beta_ref = beta_policy_forward_ref(x, params)
    A = packed["action_dim"]
    assert alpha.shape == (x.shape[0], A) and beta.shape == (x.shape[0], A)
    # bf16 MXU inputs/activations (f32 accumulate) -> looser tolerance.
    assert jnp.allclose(alpha, alpha_ref, atol=2e-2, rtol=2e-2)
    assert jnp.allclose(beta, beta_ref, atol=2e-2, rtol=2e-2)
    assert bool(jnp.all(alpha >= 1.0)) and bool(jnp.all(beta >= 1.0))


if __name__ == "__main__":
    obs_dim = 32
    action_dim = 8

    key = jax.random.PRNGKey(0)
    k_params, k_x1, k_x2 = jax.random.split(key, 3)
    params = init_params(k_params, obs_dim, action_dim)
    packed = pack_params(*params)

    # Small demo batch (single grid step).
    x_small = jax.random.normal(k_x1, (8, obs_dim), jnp.float32)
    _check(x_small, packed, params)

    # Ragged batch with a small block_b to exercise multi-step grid + padding.
    x_multi = jax.random.normal(k_x2, (40, obs_dim), jnp.float32)
    _check(x_multi, packed, params, block_b=16)

    print("KERNEL_OK")
</pallas_src>

<mosaic_0001>
module attributes {stable_mosaic.version = 11 : i64} {
  func.func @beta_policy_kernel(%arg0: i32, %arg1: memref<8x128xbf16, #tpu.memory_space<vmem>>, %arg2: memref<128x256xbf16, #tpu.memory_space<vmem>>, %arg3: memref<1x256xf32, #tpu.memory_space<vmem>>, %arg4: memref<256x256xbf16, #tpu.memory_space<vmem>>, %arg5: memref<1x256xf32, #tpu.memory_space<vmem>>, %arg6: memref<256x128xbf16, #tpu.memory_space<vmem>>, %arg7: memref<1x128xf32, #tpu.memory_space<vmem>>, %arg8: memref<8x128xf32, #tpu.memory_space<vmem>>) attributes {dimension_semantics = [#tpu.dimension_semantics<parallel>], iteration_bounds = array<i64: 1>, scalar_prefetch = 0 : i64, scratch_operands = 0 : i64, tpu.core_type = #tpu.core_type<tc>, window_params = [{transform_indices = @transform_0, window_bounds = array<i64: 8, 128>}, {pipeline_mode = #tpu.pipeline_mode<synchronous>, transform_indices = @transform_1, window_bounds = array<i64: 128, 256>}, {pipeline_mode = #tpu.pipeline_mode<synchronous>, transform_indices = @transform_2, window_bounds = array<i64: 1, 256>}, {pipeline_mode = #tpu.pipeline_mode<synchronous>, transform_indices = @transform_3, window_bounds = array<i64: 256, 256>}, {pipeline_mode = #tpu.pipeline_mode<synchronous>, transform_indices = @transform_4, window_bounds = array<i64: 1, 256>}, {pipeline_mode = #tpu.pipeline_mode<synchronous>, transform_indices = @transform_5, window_bounds = array<i64: 256, 128>}, {pipeline_mode = #tpu.pipeline_mode<synchronous>, transform_indices = @transform_6, window_bounds = array<i64: 1, 128>}, {transform_indices = @transform_7, window_bounds = array<i64: 8, 128>}]} {
    %c0 = arith.constant 0 : index
    %c0_0 = arith.constant 0 : index
    %0 = vector.load %arg1[%c0, %c0_0] : memref<8x128xbf16, #tpu.memory_space<vmem>>, vector<8x128xbf16>
    %c0_1 = arith.constant 0 : index
    %c0_2 = arith.constant 0 : index
    %1 = vector.load %arg2[%c0_1, %c0_2] : memref<128x256xbf16, #tpu.memory_space<vmem>>, vector<128x256xbf16>
    %cst = arith.constant dense<0.000000e+00> : vector<8x256xf32>
    %2 = tpu.matmul %0, %1, %cst {dimension_numbers = #tpu.dot_dimension_numbers<[1], [0], [0], [1], [0, 0, 1, 1], [], []>} : vector<8x128xbf16>, vector<128x256xbf16>, vector<8x256xf32> -> vector<8x256xf32>
    %c0_3 = arith.constant 0 : index
    %c0_4 = arith.constant 0 : index
    %3 = vector.load %arg3[%c0_3, %c0_4] : memref<1x256xf32, #tpu.memory_space<vmem>>, vector<1x256xf32>
    %4 = vector.broadcast %3 : vector<1x256xf32> to vector<8x256xf32>
    %5 = arith.addf %2, %4 : vector<8x256xf32>
    %cst_5 = arith.constant 0.000000e+00 : f32
    %6 = vector.broadcast %cst_5 : f32 to vector<8x256xf32>
    %7 = arith.maximumf %5, %6 : vector<8x256xf32>
    %8 = arith.truncf %7 : vector<8x256xf32> to vector<8x256xbf16>
    %c0_6 = arith.constant 0 : index
    %c0_7 = arith.constant 0 : index
    %9 = vector.load %arg4[%c0_6, %c0_7] : memref<256x256xbf16, #tpu.memory_space<vmem>>, vector<256x256xbf16>
    %cst_8 = arith.constant dense<0.000000e+00> : vector<8x256xf32>
    %10 = tpu.matmul %8, %9, %cst_8 {dimension_numbers = #tpu.dot_dimension_numbers<[1], [0], [0], [1], [0, 0, 1, 1], [], []>} : vector<8x256xbf16>, vector<256x256xbf16>, vector<8x256xf32> -> vector<8x256xf32>
    %c0_9 = arith.constant 0 : index
    %c0_10 = arith.constant 0 : index
    %11 = vector.load %arg5[%c0_9, %c0_10] : memref<1x256xf32, #tpu.memory_space<vmem>>, vector<1x256xf32>
    %12 = vector.broadcast %11 : vector<1x256xf32> to vector<8x256xf32>
    %13 = arith.addf %10, %12 : vector<8x256xf32>
    %cst_11 = arith.constant 0.000000e+00 : f32
    %14 = vector.broadcast %cst_11 : f32 to vector<8x256xf32>
    %15 = arith.maximumf %13, %14 : vector<8x256xf32>
    %16 = arith.truncf %15 : vector<8x256xf32> to vector<8x256xbf16>
    %c0_12 = arith.constant 0 : index
    %c0_13 = arith.constant 0 : index
    %17 = vector.load %arg6[%c0_12, %c0_13] : memref<256x128xbf16, #tpu.memory_space<vmem>>, vector<256x128xbf16>
    %cst_14 = arith.constant dense<0.000000e+00> : vector<8x128xf32>
    %18 = tpu.matmul %16, %17, %cst_14 {dimension_numbers = #tpu.dot_dimension_numbers<[1], [0], [0], [1], [0, 0, 1, 1], [], []>} : vector<8x256xbf16>, vector<256x128xbf16>, vector<8x128xf32> -> vector<8x128xf32>
    %c0_15 = arith.constant 0 : index
    %c0_16 = arith.constant 0 : index
    %19 = vector.load %arg7[%c0_15, %c0_16] : memref<1x128xf32, #tpu.memory_space<vmem>>, vector<1x128xf32>
    %20 = vector.broadcast %19 : vector<1x128xf32> to vector<8x128xf32>
    %21 = arith.addf %18, %20 : vector<8x128xf32>
    %cst_17 = arith.constant 0.000000e+00 : f32
    %22 = vector.broadcast %cst_17 : f32 to vector<8x128xf32>
    %23 = arith.maximumf %21, %22 : vector<8x128xf32>
    %24 = math.absf %21 : vector<8x128xf32>
    %cst_18 = arith.constant 0.000000e+00 : f32
    %25 = vector.broadcast %cst_18 : f32 to vector<8x128xf32>
    %26 = arith.subf %25, %24 : vector<8x128xf32>
    %27 = math.exp %26 : vector<8x128xf32>
    %28 = math.log1p %27 : vector<8x128xf32>
    %29 = arith.addf %23, %28 : vector<8x128xf32>
    %cst_19 = arith.constant 1.000000e+00 : f32
    %30 = vector.broadcast %cst_19 : f32 to vector<8x128xf32>
    %31 = arith.addf %29, %30 : vector<8x128xf32>
    %c0_20 = arith.constant 0 : index
    %c0_21 = arith.constant 0 : index
    %32 = vector.load %arg8[%c0_20, %c0_21] : memref<8x128xf32, #tpu.memory_space<vmem>>, vector<8x128xf32>
    tpu.vector_store %arg8[%c0_20, %c0_21], %31 {strides = array<i32>} : memref<8x128xf32, #tpu.memory_space<vmem>>, vector<8x128xf32>,
    return
  }
  func.func @transform_0(%arg0: i32) -> (i32, i32) {
    %c0_i32 = arith.constant 0 : i32
    %c0_i32_0 = arith.constant 0 : i32
    return %arg0, %c0_i32 : i32, i32
  }
  func.func @transform_1(%arg0: i32) -> (i32, i32) {
    %c0_i32 = arith.constant 0 : i32
    %c0_i32_0 = arith.constant 0 : i32
    %c0_i32_1 = arith.constant 0 : i32
    return %c0_i32, %c0_i32_0 : i32, i32
  }
  func.func @transform_2(%arg0: i32) -> (i32, i32) {
    %c0_i32 = arith.constant 0 : i32
    %c0_i32_0 = arith.constant 0 : i32
    %c0_i32_1 = arith.constant 0 : i32
    return %c0_i32, %c0_i32_0 : i32, i32
  }
  func.func @transform_3(%arg0: i32) -> (i32, i32) {
    %c0_i32 = arith.constant 0 : i32
    %c0_i32_0 = arith.constant 0 : i32
    %c0_i32_1 = arith.constant 0 : i32
    return %c0_i32, %c0_i32_0 : i32, i32
  }
  func.func @transform_4(%arg0: i32) -> (i32, i32) {
    %c0_i32 = arith.constant 0 : i32
    %c0_i32_0 = arith.constant 0 : i32
    %c0_i32_1 = arith.constant 0 : i32
    return %c0_i32, %c0_i32_0 : i32, i32
  }
  func.func @transform_5(%arg0: i32) -> (i32, i32) {
    %c0_i32 = arith.constant 0 : i32
    %c0_i32_0 = arith.constant 0 : i32
    %c0_i32_1 = arith.constant 0 : i32
    return %c0_i32, %c0_i32_0 : i32, i32
  }
  func.func @transform_6(%arg0: i32) -> (i32, i32) {
    %c0_i32 = arith.constant 0 : i32
    %c0_i32_0 = arith.constant 0 : i32
    %c0_i32_1 = arith.constant 0 : i32
    return %c0_i32, %c0_i32_0 : i32, i32
  }
  func.func @transform_7(%arg0: i32) -> (i32, i32) {
    %c0_i32 = arith.constant 0 : i32
    %c0_i32_0 = arith.constant 0 : i32
    return %arg0, %c0_i32 : i32, i32
  }
}

</mosaic_0001>

<bundles_post_ra>
// kernel: tpu_custom_call.1
= control target key start
LH: loop header
LB: loop body
LE: loop exit
PB: predicated region body
PF: predicated region fallthrough
CT: control target
= control target key end

     0   :  { %12 = vsyncpa [#allocation3], 0  ;;  %s1243_s0 = inlined_call_operand.hbm [shape: bf16[8,128], index: 0, kind: input, shape index: {}]   ;;  %s1244_s1 = inlined_call_operand.hbm [shape: bf16[128,256], index: 1, kind: input, shape index: {}]   ;;  %s1245_s2 = inlined_call_operand.hbm [shape: f32[1,256], index: 2, kind: input, shape index: {}]   ;;  %s1246_s3 = inlined_call_operand.hbm [shape: bf16[256,256], index: 3, kind: input, shape index: {}]   ;;  %s1247_s4 = inlined_call_operand.vmem [shape: f32[1,256], index: 4, kind: input, shape index: {}]   ;;  %s1248_s5 = inlined_call_operand.hbm [shape: bf16[256,128], index: 5, kind: input, shape index: {}]   ;;  %s1249_s6 = inlined_call_operand.vmem [shape: f32[1,128], index: 6, kind: input, shape index: {}]   ;;  %s1250_s7 = inlined_call_operand.hbm [shape: f32[8,128], index: 7, kind: output, shape index: {}]  }
   0x1   :  { %13 = vsyncpa [#allocation6], 0 }
   0x2   :  { %14 = vsyncpa [#allocation9], 0  ;;  %s31_s26 = sshll.u32 %s1244_s1, 4  ;;  %s32_s26 = int_to_ptr.hbm [resolvable:$true] %s31_s26 }
   0x3   :  { %15 = vsyncpa [#allocation4], 0  ;;  %s1169_s27 = smov [#allocation5]   ;;  %s55_s8 = sshll.u32 %s1246_s3, 4  ;;  %s56_s8 = int_to_ptr.hbm [resolvable:$true] %s55_s8 }
   0x4   :  { %s33_s28 = sshll.u32 %s1169_s27, 4  ;;  %s1170_s9 = smov 128   ;;  %s34_s28 = int_to_ptr.vmem [resolvable:$true] %s33_s28 }
   0x5   :  { %s1171_s10 = smov 8   ;;  %s1172_s11 = smov [#allocation8]  }
   0x6   :  { %39 = dma.hbm_to_vmem [thread:$0]  %s32_s26, 2048, %s34_s28, [#allocation6], %s1170_s9, %s1170_s9, %s1171_s10  }
   0x7   :  { %s57_s12 = sshll.u32 %s1172_s11, 4  ;;  %s21_s15 = sshll.u32 %s1243_s0, 4  ;;  %s58_s12 = int_to_ptr.vmem [resolvable:$true] %s57_s12  ;;  %s22_s15 = int_to_ptr.hbm [resolvable:$true] %s21_s15 }
   0x8   :  { %63 = dma.hbm_to_vmem [thread:$0]  %s56_s8, 4096, %s58_s12, [#allocation9], %s1170_s9, %s1170_s9, %s1171_s10  }
   0x9   :  { %s45_s17 = sshll.u32 %s1245_s2, 4  ;;  %s1173_s18 = smov [#allocation2]   ;;  %s46_s17 = int_to_ptr.hbm [resolvable:$true] %s45_s17 }
   0xa   :  { %s23_s19 = sshll.u32 %s1173_s18, 4  ;;  %s1174_s3 = smov [#allocation7]   ;;  %s24_s19 = int_to_ptr.vmem [resolvable:$true] %s23_s19 }
   0xb   :  { %26 = dma.hbm_to_vmem [thread:$0]  %s22_s15, 64, %s24_s19, [#allocation3]  }
   0xc   :  { %s47_s20 = sshll.u32 %s1174_s3, 4  ;;  %s70_s23 = sshll.u32 %s1248_s5, 4  ;;  %s48_s20 = int_to_ptr.vmem [resolvable:$true] %s47_s20  ;;  %s71_s23 = int_to_ptr.hbm [resolvable:$true] %s70_s23 }
   0xd   :  { %50 = dma.hbm_to_vmem [thread:$0]  %s46_s17, 32, %s48_s20, [#allocation6]  }
   0xe   :  { %s1175_s0 = smov [#allocation10]   ;;  %s1176_s25 = smov 64  }
   0xf   :  { %s72_s24 = sshll.u32 %s1175_s0, 4  ;;  %s1177_s26 = smov 4   ;;  %s73_s24 = int_to_ptr.vmem [resolvable:$true] %s72_s24 }
  0x10   :  { %78 = dma.hbm_to_vmem [thread:$0]  %s71_s23, 2048, %s73_s24, [#allocation9], %s1176_s25, %s1176_s25, %s1177_s26  }
  0x11   :  { %1161 = dma.done.wait [#allocation3], 64  }
  0x12   :  { %1162 = vsyncadd [#allocation3], 4294967232 }
  0x13   :  { %1163 = dma.done.wait [#allocation6], 2080  }
  0x14   :  { %1164 = vsyncadd [#allocation6], 4294965216 }
  0x15   :  { %1165 = dma.done.wait [#allocation9], 6144  }
  0x16   :  { %1166 = vsyncadd [#allocation9], 4294961152  ;;  %v740_v0 = vld [vmem:[#allocation5 + $0x70] sm:$0xf]  ;;  %v953_v1 = vld [vmem:[#allocation5 + $0x74] sm:$0xf0] }
  0x17   :  { %v952_v2 = vld [vmem:[#allocation5 + $0x74] sm:$0xf]  ;;  %v741_v3 = vor.u32 %v953_v1, %v740_v0  ;;  %v742_v4 = vld [vmem:[#allocation5 + $0x78] sm:$0xf0]  ;;  %v732_v5 = vld [vmem:[#allocation5 + $0x60] sm:$0xf] }
  0x18   :  { %v951_v6 = vld [vmem:[#allocation5 + $0x64] sm:$0xf0]  ;;  %v745_v7 = vor.u32 %v952_v2, %v742_v4  ;;  %v950_v8 = vld [vmem:[#allocation5 + $0x64] sm:$0xf]  ;;  %v734_v9 = vld [vmem:[#allocation5 + $0x68] sm:$0xf0] }
  0x19   :  { %204 = vmatpush.bf16.msra.mxu0 %v741_v3  ;;  %v733_v10 = vor.u32 %v951_v6, %v732_v5  ;;  %v737_v11 = vor.u32 %v950_v8, %v734_v9  ;;  %v724_v12 = vld [vmem:[#allocation5 + $0x50] sm:$0xf]  ;;  %v949_v13 = vld [vmem:[#allocation5 + $0x54] sm:$0xf0]  ;;  %v948_v14 = vld [vmem:[#allocation5 + $0x54] sm:$0xf] }
  0x1a   :  { %217 = vmatpush.bf16.msra.mxu1 %v745_v7  ;;  %v726_v15 = vld [vmem:[#allocation5 + $0x58] sm:$0xf0]  ;;  %v725_v16 = vor.u32 %v949_v13, %v724_v12  ;;  %v716_v18 = vld [vmem:[#allocation5 + $0x40] sm:$0xf]  ;;  %v947_v19 = vld [vmem:[#allocation5 + $0x44] sm:$0xf0] }
  0x1b   :  { %v729_v17 = vor.u32 %v948_v14, %v726_v15  ;;  %v946_v20 = vld [vmem:[#allocation5 + $0x44] sm:$0xf]  ;;  %v718_v21 = vld [vmem:[#allocation5 + $0x48] sm:$0xf0]  ;;  %v717_v22 = vor.u32 %v947_v19, %v716_v18  ;;  %v804_v23 = vld [vmem:[#allocation8 + $0x70] sm:$0xf] }
  0x1c   :  { %v969_v24 = vld [vmem:[#allocation8 + $0x74] sm:$0xf0]  ;;  %v868_v25 = vld [vmem:[#allocation8 + $0xf0] sm:$0xf]  ;;  %v721_v26 = vor.u32 %v946_v20, %v718_v21  ;;  %v796_v34 = vld [vmem:[#allocation8 + $0x60] sm:$0xf] }
  0x1d   :  { %205 = vmatpush.bf16.msra.mxu0 %v733_v10  ;;  %v708_v27 = vld [vmem:[#allocation5 + $0x30] sm:$0xf]  ;;  %v945_v28 = vld [vmem:[#allocation5 + $0x34] sm:$0xf0]  ;;  %v805_v29 = vor.u32 %v969_v24, %v804_v23  ;;  %v944_v31 = vld [vmem:[#allocation5 + $0x34] sm:$0xf] }
  0x1e   :  { %218 = vmatpush.bf16.msra.mxu1 %v737_v11  ;;  %v985_v30 = vld [vmem:[#allocation8 + $0xf4] sm:$0xf0]  ;;  %v967_v35 = vld [vmem:[#allocation8 + $0x64] sm:$0xf0]  ;;  %v860_v36 = vld [vmem:[#allocation8 + $0xe0] sm:$0xf]  ;;  %v709_v38 = vor.u32 %v945_v28, %v708_v27 }
  0x1f   :  { %v710_v32 = vld [vmem:[#allocation5 + $0x38] sm:$0xf0]  ;;  %v869_v33 = vor.u32 %v985_v30, %v868_v25  ;;  %432 = vmatpush.bf16.msra.mxu2 %v805_v29  ;;  %v983_v37 = vld [vmem:[#allocation8 + $0xe4] sm:$0xf0]  ;;  %v700_v39 = vld [vmem:[#allocation5 + $0x20] sm:$0xf]  ;;  %v797_v41 = vor.u32 %v967_v35, %v796_v34 }
  0x20   :  { %v943_v40 = vld [vmem:[#allocation5 + $0x24] sm:$0xf0]  ;;  %v861_v42 = vor.u32 %v983_v37, %v860_v36  ;;  %v713_v43 = vor.u32 %v944_v31, %v710_v32  ;;  %v942_v44 = vld [vmem:[#allocation5 + $0x24] sm:$0xf]  ;;  %v788_v45 = vld [vmem:[#allocation8 + $0x50] sm:$0xf] }
  0x21   :  { %206 = vmatpush.bf16.msra.mxu0 %v725_v16  ;;  %445 = vmatpush.bf16.msra.mxu3 %v869_v33  ;;  %v965_v46 = vld [vmem:[#allocation8 + $0x54] sm:$0xf0]  ;;  %v702_v47 = vld [vmem:[#allocation5 + $0x28] sm:$0xf0]  ;;  %v852_v48 = vld [vmem:[#allocation8 + $0xd0] sm:$0xf]  ;;  %v701_v51 = vor.u32 %v943_v40, %v700_v39 }
  0x22   :  { %219 = vmatpush.bf16.msra.mxu1 %v729_v17  ;;  %v981_v49 = vld [vmem:[#allocation8 + $0xd4] sm:$0xf0]  ;;  %v789_v50 = vor.u32 %v965_v46, %v788_v45  ;;  %v692_v52 = vld [vmem:[#allocation5 + $0x10] sm:$0xf]  ;;  %v780_v54 = vld [vmem:[#allocation8 + $0x40] sm:$0xf]  ;;  %v705_v56 = vor.u32 %v942_v44, %v702_v47 }
  0x23   :  { %433 = vmatpush.bf16.msra.mxu2 %v797_v41  ;;  %v853_v53 = vor.u32 %v981_v49, %v852_v48  ;;  %v963_v55 = vld [vmem:[#allocation8 + $0x44] sm:$0xf0]  ;;  %v941_v57 = vld [vmem:[#allocation5 + $0x14] sm:$0xf0]  ;;  %v844_v58 = vld [vmem:[#allocation8 + $0xc0] sm:$0xf] }
  0x24   :  { %v979_v59 = vld [vmem:[#allocation8 + $0xc4] sm:$0xf0]  ;;  %v940_v60 = vld [vmem:[#allocation5 + $0x14] sm:$0xf]  ;;  %v694_v61 = vld [vmem:[#allocation5 + $0x18] sm:$0xf0]  ;;  %v781_v63 = vor.u32 %v963_v55, %v780_v54  ;;  %v693_v0 = vor.u32 %v941_v57, %v692_v52 }
  0x25   :  { %207 = vmatpush.bf16.msra.mxu0 %v717_v22  ;;  %446 = vmatpush.bf16.msra.mxu3 %v861_v42  ;;  %v684_v62 = vld [vmem:[#allocation5] sm:$0xf]  ;;  %v939_v1 = vld [vmem:[#allocation5 + $0x4] sm:$0xf0]  ;;  %v845_v2 = vor.u32 %v979_v59, %v844_v58  ;;  %v772_v3 = vld [vmem:[#allocation8 + $0x30] sm:$0xf]  ;;  %v697_v5 = vor.u32 %v940_v60, %v694_v61 }
  0x26   :  { %220 = vmatpush.bf16.msra.mxu1 %v721_v26  ;;  %v961_v4 = vld [vmem:[#allocation8 + $0x34] sm:$0xf0]  ;;  %v938_v6 = vld [vmem:[#allocation5 + $0x4] sm:$0xf]  ;;  %v836_v7 = vld [vmem:[#allocation8 + $0xb0] sm:$0xf]  ;;  %v685_v15 = vor.u32 %v939_v1, %v684_v62 }
  0x27   :  { %434 = vmatpush.bf16.msra.mxu2 %v789_v50  ;;  %v977_v8 = vld [vmem:[#allocation8 + $0xb4] sm:$0xf0]  ;;  %v686_v9 = vld [vmem:[#allocation5 + $0x8] sm:$0xf0]  ;;  %v968_v10 = vld [vmem:[#allocation8 + $0x74] sm:$0xf]  ;;  %v773_v14 = vor.u32 %v961_v4, %v772_v3 }
  0x28   :  { %v806_v11 = vld [vmem:[#allocation8 + $0x78] sm:$0xf0]  ;;  %v984_v12 = vld [vmem:[#allocation8 + $0xf4] sm:$0xf]  ;;  %v837_v16 = vor.u32 %v977_v8, %v836_v7  ;;  %v764_v17 = vld [vmem:[#allocation8 + $0x20] sm:$0xf]  ;;  %v689_v19 = vor.u32 %v938_v6, %v686_v9 }
  0x29   :  { %208 = vmatpush.bf16.msra.mxu0 %v709_v38  ;;  %447 = vmatpush.bf16.msra.mxu3 %v853_v53  ;;  %v870_v13 = vld [vmem:[#allocation8 + $0xf8] sm:$0xf0]  ;;  %v959_v18 = vld [vmem:[#allocation8 + $0x24] sm:$0xf0]  ;;  %v809_v20 = vor.u32 %v968_v10, %v806_v11  ;;  %v828_v21 = vld [vmem:[#allocation8 + $0xa0] sm:$0xf] }
  0x2a   :  { %221 = vmatpush.bf16.msra.mxu1 %v713_v43  ;;  %v975_v22 = vld [vmem:[#allocation8 + $0xa4] sm:$0xf0]  ;;  %v873_v23 = vor.u32 %v984_v12, %v870_v13  ;;  %v966_v24 = vld [vmem:[#allocation8 + $0x64] sm:$0xf]  ;;  %v798_v25 = vld [vmem:[#allocation8 + $0x68] sm:$0xf0]  ;;  %v765_v28 = vor.u32 %v959_v18, %v764_v17 }
  0x2b   :  { %435 = vmatpush.bf16.msra.mxu2 %v781_v63  ;;  %v982_v26 = vld [vmem:[#allocation8 + $0xe4] sm:$0xf]  ;;  %v862_v27 = vld [vmem:[#allocation8 + $0xe8] sm:$0xf0]  ;;  %v101_v29 = vld [vmem:[#allocation2] sm:$0xf]  ;;  %v829_v30 = vor.u32 %v975_v22, %v828_v21  ;;  %v801_v31 = vor.u32 %v966_v24, %v798_v25 }
  0x2c   :  { %v865_v32 = vor.u32 %v982_v26, %v862_v27  ;;  %v964_v33 = vld [vmem:[#allocation8 + $0x54] sm:$0xf]  ;;  %v790_v34 = vld [vmem:[#allocation8 + $0x58] sm:$0xf0]  ;;  %v962_v39 = vld [vmem:[#allocation8 + $0x44] sm:$0xf] }
  0x2d   :  { %209 = vmatpush.bf16.msra.mxu0 %v701_v51  ;;  %448 = vmatpush.bf16.msra.mxu3 %v845_v2  ;;  %v980_v35 = vld [vmem:[#allocation8 + $0xd4] sm:$0xf]  ;;  %v854_v36 = vld [vmem:[#allocation8 + $0xd8] sm:$0xf0]  ;;  %v793_v37 = vor.u32 %v964_v33, %v790_v34  ;;  %v782_v40 = vld [vmem:[#allocation8 + $0x48] sm:$0xf0] }
  0x2e   :  { %222 = vmatpush.bf16.msra.mxu1 %v705_v56  ;;  %v857_v38 = vor.u32 %v980_v35, %v854_v36  ;;  %v978_v41 = vld [vmem:[#allocation8 + $0xc4] sm:$0xf]  ;;  %v846_v42 = vld [vmem:[#allocation8 + $0xc8] sm:$0xf0]  ;;  %v785_v43 = vor.u32 %v962_v39, %v782_v40  ;;  %v960_v45 = vld [vmem:[#allocation8 + $0x34] sm:$0xf] }
  0x2f   :  { %436 = vmatpush.bf16.msra.mxu2 %v773_v14  ;;  %v849_v44 = vor.u32 %v978_v41, %v846_v42  ;;  %v774_v46 = vld [vmem:[#allocation8 + $0x38] sm:$0xf0]  ;;  %v976_v47 = vld [vmem:[#allocation8 + $0xb4] sm:$0xf]  ;;  %v958_v51 = vld [vmem:[#allocation8 + $0x24] sm:$0xf] }
  0x30   :  { %v838_v48 = vld [vmem:[#allocation8 + $0xb8] sm:$0xf0]  ;;  %v777_v49 = vor.u32 %v960_v45, %v774_v46  ;;  %v766_v52 = vld [vmem:[#allocation8 + $0x28] sm:$0xf0]  ;;  %v974_v53 = vld [vmem:[#allocation8 + $0xa4] sm:$0xf] }
  0x31   :  { %210 = vmatpush.bf16.msra.mxu0 %v693_v0  ;;  %449 = vmatpush.bf16.msra.mxu3 %v837_v16  ;;  %v841_v50 = vor.u32 %v976_v47, %v838_v48  ;;  %v830_v54 = vld [vmem:[#allocation8 + $0xa8] sm:$0xf0]  ;;  %v769_v55 = vor.u32 %v958_v51, %v766_v52  ;;  %v756_v57 = vld [vmem:[#allocation8 + $0x10] sm:$0xf]  ;;  %v957_v58 = vld [vmem:[#allocation8 + $0x14] sm:$0xf0] }
  0x32   :  { %223 = vmatpush.bf16.msra.mxu1 %v697_v5  ;;  %v833_v56 = vor.u32 %v974_v53, %v830_v54  ;;  %v820_v59 = vld [vmem:[#allocation8 + $0x90] sm:$0xf]  ;;  %v757_v60 = vor.u32 %v957_v58, %v756_v57  ;;  %v973_v61 = vld [vmem:[#allocation8 + $0x94] sm:$0xf0]  ;;  %v956_v62 = vld [vmem:[#allocation8 + $0x14] sm:$0xf] }
  0x33   :  { %437 = vmatpush.bf16.msra.mxu2 %v765_v28  ;;  %v758_v63 = vld [vmem:[#allocation8 + $0x18] sm:$0xf0]  ;;  %v821_v0 = vor.u32 %v973_v61, %v820_v59  ;;  %v972_v2 = vld [vmem:[#allocation8 + $0x94] sm:$0xf]  ;;  %v748_v5 = vld [vmem:[#allocation8] sm:$0xf] }
  0x34   :  { %v761_v1 = vor.u32 %v956_v62, %v758_v63  ;;  %v822_v3 = vld [vmem:[#allocation8 + $0x98] sm:$0xf0]  ;;  %v955_v6 = vld [vmem:[#allocation8 + $0x4] sm:$0xf0]  ;;  %v812_v7 = vld [vmem:[#allocation8 + $0x80] sm:$0xf] }
  0x35   :  { %211 = vmatpush.bf16.msra.mxu0 %v685_v15  ;;  %450 = vmatpush.bf16.msra.mxu3 %v829_v30  ;;  %v825_v4 = vor.u32 %v972_v2, %v822_v3  ;;  %v749_v8 = vor.u32 %v955_v6, %v748_v5  ;;  %v971_v9 = vld [vmem:[#allocation8 + $0x84] sm:$0xf0]  ;;  %v954_v10 = vld [vmem:[#allocation8 + $0x4] sm:$0xf]  ;;  %v750_v11 = vld [vmem:[#allocation8 + $0x8] sm:$0xf0] }
  0x36   :  { %224 = vmatpush.bf16.msra.mxu1 %v689_v19  ;;  %v813_v12 = vor.u32 %v971_v9, %v812_v7  ;;  %v753_v13 = vor.u32 %v954_v10, %v750_v11  ;;  %v970_v14 = vld [vmem:[#allocation8 + $0x84] sm:$0xf]  ;;  %v814_v15 = vld [vmem:[#allocation8 + $0x88] sm:$0xf0]  ;;  %v1001_v17 = vld [vmem:[#allocation10 + $0x78] sm:$0xff]  ;;  %s670_s8 = sshll.u32 %s1250_s7, 4  ;;  %s671_s8 = int_to_ptr.hbm [resolvable:$true] %s670_s8 }
  0x37   :  { %438 = vmatpush.bf16.msra.mxu2 %v757_v60  ;;  %v817_v16 = vor.u32 %v970_v14, %v814_v15  ;;  %v993_v18 = vld [vmem:[#allocation10 + $0x38] sm:$0xff]  ;;  %v1000_v19 = vld [vmem:[#allocation10 + $0x70] sm:$0xff]  ;;  %v999_v21 = vld [vmem:[#allocation10 + $0x68] sm:$0xff] }
  0x38   :  { %212 = vmatmul.bf16.vlgmr.msra.gmra.mxu0 %v101_v29  ;;  %v991_v22 = vld [vmem:[#allocation10 + $0x28] sm:$0xff]  ;;  %v990_v24 = vld [vmem:[#allocation10 + $0x20] sm:$0xff]  ;;  %v997_v25 = vld [vmem:[#allocation10 + $0x58] sm:$0xff] }
  0x39   :  { %458 = vmatpush.bf16.msrb.mxu0 %v809_v20  ;;  %225 = vmatmul.bf16.vlgmr.msra.gmra.mxu1 %v101_v29  ;;  %v992_v20 = vld [vmem:[#allocation10 + $0x30] sm:$0xff]  ;;  %v118_v26 = vld [vmem:[#allocation7] sm:$0x3]  ;;  %v995_v41 = vld [vmem:[#allocation10 + $0x48] sm:$0xff] }
  0x3a   :  { %471 = vmatpush.bf16.msrb.mxu1 %v873_v23  ;;  %451 = vmatpush.bf16.msra.mxu3 %v821_v0  ;;  %v998_v23 = vld [vmem:[#allocation10 + $0x60] sm:$0xff]  ;;  %v996_v27 = vld [vmem:[#allocation10 + $0x50] sm:$0xff]  ;;  %v120_v28 = vperm.slane %v118_v26, 0  ;;  %v121_v29 = vperm.slane %v118_v26, 1  ;;  %v989_v40 = vld [vmem:[#allocation10 + $0x18] sm:$0xff] }
  0x3b   :  { %439 = vmatpush.bf16.msra.mxu2 %v749_v8  ;;  %v988_v42 = vld [vmem:[#allocation10 + $0x10] sm:$0xff]  ;;  %v986_v45 = vld [vmem:[#allocation10] sm:$0xff]  ;;  %v266_v46 = vld [vmem:[%s1247_s4] sm:$0x3] }
  0x3c   :  { %v269_v47 = vperm.slane %v266_v46, 1  ;;  %v268_v52 = vperm.slane %v266_v46, 0  ;;  %v1012_v2 = vld [vmem:[%s1249_s6] ss:$0 sm:$0xff]  ;;  %s1178_s6 = smov [#allocation11]  }
  0x3d   :  { %459 = vmatpush.bf16.msrb.mxu0 %v801_v31  ;;  %s668_s28 = sshll.u32 %s1178_s6, 4  ;;  %s669_s28 = int_to_ptr.vmem [resolvable:$true] %s668_s28 }
  0x3e   :  { %472 = vmatpush.bf16.msrb.mxu1 %v865_v32  ;;  %452 = vmatpush.bf16.msra.mxu3 %v813_v12 }
  0x3f   :  { %620 = vmatpush.bf16.msrb.mxu2 %v993_v18 }
  0x41   :  { %460 = vmatpush.bf16.msrb.mxu0 %v793_v37 }
  0x42   :  { %473 = vmatpush.bf16.msrb.mxu1 %v857_v38  ;;  %633 = vmatpush.bf16.msrb.mxu3 %v1001_v17 }
  0x43   :  { %621 = vmatpush.bf16.msrb.mxu2 %v992_v20 }
  0x45   :  { %461 = vmatpush.bf16.msrb.mxu0 %v785_v43  ;;  %v994_v43 = vld [vmem:[#allocation10 + $0x40] sm:$0xff] }
  0x46   :  { %474 = vmatpush.bf16.msrb.mxu1 %v849_v44  ;;  %634 = vmatpush.bf16.msrb.mxu3 %v1000_v19  ;;  %v987_v44 = vld [vmem:[#allocation10 + $0x8] sm:$0xff] }
  0x47   :  { %622 = vmatpush.bf16.msrb.mxu2 %v991_v22 }
  0x49   :  { %462 = vmatpush.bf16.msrb.mxu0 %v777_v49 }
  0x4a   :  { %475 = vmatpush.bf16.msrb.mxu1 %v841_v50  ;;  %635 = vmatpush.bf16.msrb.mxu3 %v999_v21 }
  0x4b   :  { %623 = vmatpush.bf16.msrb.mxu2 %v990_v24 }
  0x4d   :  { %463 = vmatpush.bf16.msrb.mxu0 %v769_v55 }
  0x4e   :  { %476 = vmatpush.bf16.msrb.mxu1 %v833_v56  ;;  %636 = vmatpush.bf16.msrb.mxu3 %v998_v23 }
  0x4f   :  { %624 = vmatpush.bf16.msrb.mxu2 %v989_v40 }
  0x51   :  { %464 = vmatpush.bf16.msrb.mxu0 %v761_v1 }
  0x52   :  { %477 = vmatpush.bf16.msrb.mxu1 %v825_v4  ;;  %637 = vmatpush.bf16.msrb.mxu3 %v997_v25 }
  0x53   :  { %625 = vmatpush.bf16.msrb.mxu2 %v988_v42 }
  0x55   :  { %465 = vmatpush.bf16.msrb.mxu0 %v753_v13 }
  0x56   :  { %478 = vmatpush.bf16.msrb.mxu1 %v817_v16  ;;  %638 = vmatpush.bf16.msrb.mxu3 %v996_v27 }
  0x57   :  { %626 = vmatpush.bf16.msrb.mxu2 %v987_v44 }
  0x5a   :  { %639 = vmatpush.bf16.msrb.mxu3 %v995_v41 }
  0x5b   :  { %627 = vmatpush.bf16.msrb.mxu2 %v986_v45 }
  0x5e   :  { %640 = vmatpush.bf16.msrb.mxu3 %v994_v43 }
  0xb5   :  { %v213_v30 = vpop.f32.mrf.mxu0 }
  0xb6   :  { %v214_v31 = vadd.f32 %v213_v30, %v120_v28  ;;  %v226_v32 = vpop.f32.mrf.mxu1 }
  0xb7   :  { %v227_v33 = vadd.f32 %v226_v32, %v121_v29 }
  0xb8   :  { %v230_v34 = vmax.f32 %v214_v31, 0.0 }
  0xb9   :  { %v231_v35 = vmax.f32 %v227_v33, 0.0 }
  0xba   :  { %v232_v36 = vpack.c.bf16 %v230_v34, %v230_v34 }
  0xbb   :  { %v233_v37 = vpack.c.bf16 %v231_v35, %v231_v35 }
  0xbc   :  { %440 = vmatmul.bf16.vlgmr.msra.gmra.mxu2 %v232_v36  ;;  %466 = vmatmul.bf16.vlgmr.msrb.gmra.mxu0 %v232_v36 }
  0xbd   :  { %453 = vmatmul.bf16.vlgmr.msra.gmra.mxu3 %v233_v37  ;;  %479 = vmatmul.bf16.vlgmr.msrb.gmra.mxu1 %v233_v37  ;;  %v215_v38 = vpop.f32.mrf.mxu0 }
  0xbe   :  { %v228_v39 = vpop.f32.mrf.mxu1 }
 0x139   :  { %v467_v48 = vpop.f32.mrf.mxu0 }
 0x13a   :  { %v468_v49 = vadd.f32 %v467_v48, %v269_v47  ;;  %v480_v50 = vpop.f32.mrf.mxu1 }
 0x13c   :  { %v481_v51 = vadd.f32 %v480_v50, %v468_v49 }
 0x13e   :  { %v485_v53 = vmax.f32 %v481_v51, 0.0 }
 0x13f   :  { %v441_v54 = vpop.f32.mrf.mxu2 }
 0x140   :  { %v487_v55 = vpack.c.bf16 %v485_v53, %v485_v53  ;;  %v442_v56 = vadd.f32 %v441_v54, %v268_v52  ;;  %v454_v57 = vpop.f32.mrf.mxu3 }
 0x141   :  { %v469_v58 = vpop.f32.mrf.mxu0 }
 0x142   :  { %v455_v59 = vadd.f32 %v454_v57, %v442_v56  ;;  %v482_v60 = vpop.f32.mrf.mxu1  ;;  %641 = vmatmul.bf16.vlgmr.msrb.gmra.mxu3 %v487_v55 }
 0x144   :  { %v484_v61 = vmax.f32 %v455_v59, 0.0 }
 0x146   :  { %v486_v62 = vpack.c.bf16 %v484_v61, %v484_v61 }
 0x147   :  { %v443_v63 = vpop.f32.mrf.mxu2 }
 0x148   :  { %v456_v0 = vpop.f32.mrf.mxu3  ;;  %628 = vmatmul.bf16.vlgmr.msrb.gmra.mxu2 %v486_v62 }
 0x1c5   :  { %v642_v1 = vpop.f32.mrf.mxu3 }
 0x1cb   :  { %v629_v3 = vpop.f32.mrf.mxu2 }
 0x1cc   :  { %v630_v4 = vadd.f32 %v1012_v2, %v629_v3 }
 0x1cd   :  { %v644_v5 = vpop.f32.mrf.mxu3 }
 0x1ce   :  { %v643_v6 = vadd.f32 %v642_v1, %v630_v4 }
 0x1d0   :  { %v647_v7 = vand.u32 2147483647, %v643_v6  ;;  %v646_v19 = vmax.f32 %v643_v6, 0.0 }
 0x1d2   :  { %v648_v8 = vsub.f32 0.0, %v647_v7 }
 0x1d3   :  { %v631_v9 = vpop.f32.mrf.mxu2 }
 0x1d4   :  { %v649_v10 = vmul.f32 1.442695, %v648_v8 }
 0x1d6   :  { %1013 = vpow2.f32 %v649_v10 }
 0x1dc   :  { %v1014_v11 = vpop.eup %1013 }
 0x1dd   :  { %v651_v12 = vadd.f32 1.0, %v1014_v11  ;;  %v654_v13 = vmul.f32 -0.5, %v1014_v11  ;;  %v657_v15 = vand.u32 2147483647, %v1014_v11 }
 0x1df   :  { %1015 = vlog2.f32 %v651_v12  ;;  %v655_v14 = vadd.f32 1.0, %v654_v13  ;;  %vm658_vm0 = vcmp.lt.f32.partialorder %v657_v15, 0.0004427343 }
 0x1e1   :  { %v656_v18 = vmul.f32 %v1014_v11, %v655_v14 }
 0x1e5   :  { %v1016_v16 = vpop.eup %1015 }
 0x1e6   :  { %v653_v17 = vmul.f32 0.6931472, %v1016_v16 }
 0x1e8   :  { %v659_v20 = vsel %vm658_vm0, %v656_v18, %v653_v17 }
 0x1e9   :  { %v660_v21 = vadd.f32 %v659_v20, %v646_v19 }
 0x1eb   :  { %v661_v22 = vadd.f32 1.0, %v660_v21 }
 0x1ed   :  { %662 = vst [vmem:[#allocation11] sm:$0xff] %v661_v22 }
 0x1ee   :  { %673 = dma.vmem_to_hbm [thread:$0]  %s669_s28, 128, %s671_s8, [#allocation4]  }
 0x1ef   :  { %1167 = dma.done.wait [#allocation4], 128  }
 0x1f0   :  { %1168 = vsyncadd [#allocation4], 4294967168 }
 0x1f1   :  { %678 = vsyncpa [#allocation3], 1 }
 0x1f2   :  { %679 = vsyncpa [#allocation6], 1 }
 0x1f3   :  { %680 = vsyncpa [#allocation9], 1 }
 0x1f4   :  { %681 = vsyncpa [#allocation4], 1 }

</bundles_post_ra>
